<compile_context>
chip_gen: v6e
topology: v6e:2x2x1
jax: 0.10.0
libtpu: 0.0.40
codegen_flags: <defaults>
</compile_context>

<pallas_src>
from functools import partial

import numpy as np
import jax
import jax.numpy as jnp
from jax.experimental import pallas as pl
from jax.experimental.pallas import tpu as pltpu


# ----------------------------------------------------------------------------
# helpers
# ----------------------------------------------------------------------------

_VMEM_LIMIT = 40 * 1024 * 1024


def _round_up(n, m):
    return ((n + m - 1) // m) * m


def _cparams(*sems):
    return pltpu.CompilerParams(dimension_semantics=sems,
                                vmem_limit_bytes=_VMEM_LIMIT)


# ----------------------------------------------------------------------------
# Pallas kernels
# ----------------------------------------------------------------------------

def _matmul_bias_kernel(a_ref, w_ref, b_ref, o_ref):
    o_ref[...] = jnp.dot(a_ref[...], w_ref[...],
                         preferred_element_type=jnp.float32) + b_ref[...]


@partial(jax.jit, static_argnames=("cout",))
def matmul_bias(a, w, bias, cout=None):
    """a: (M, K) float, w: (K, Npad) bf16 with Npad % 128 == 0, bias: (Npad,)."""
    M, K = a.shape
    Npad = w.shape[1]
    a = a.astype(jnp.bfloat16)                    # bf16 activation DMA
    bm, Mp = None, M
    for c in (512, 256, 128, 64, 32, 16, 8):
        if M % c == 0:
            bm = c
            break
    if bm is None:                                # awkward M: pad rows, slice after
        bm = 128 if M > 128 else 8
        Mp = _round_up(M, bm)
        a = jnp.pad(a, ((0, Mp - M), (0, 0)))
    while bm > 8 and bm * K * 2 > (8 << 20):      # cap A block at ~8 MiB bf16
        bm //= 2
    bn = 128
    for c in (512, 384, 256, 128):
        if Npad % c == 0 and K * c * 2 <= (8 << 20):
            bn = c
            break
    out = pl.pallas_call(
        _matmul_bias_kernel,
        out_shape=jax.ShapeDtypeStruct((Mp, Npad), jnp.float32),
        # N tiles outer, M tiles inner: weight block index depends only on the
        # outer axis -> it is DMA'd once per N tile and stays VMEM-resident
        # across all M tiles (no repeated weight traffic).
        grid=(Npad // bn, Mp // bm),
        in_specs=[
            pl.BlockSpec((bm, K), lambda j, i: (i, 0)),
            pl.BlockSpec((K, bn), lambda j, i: (0, j)),
            pl.BlockSpec((1, bn), lambda j, i: (0, j)),
        ],
        out_specs=pl.BlockSpec((bm, bn), lambda j, i: (i, j)),
        compiler_params=_cparams("parallel", "parallel"),
    )(a, w, bias.reshape(1, Npad))
    if Mp != M:
        out = out[:M]
    if cout is not None and cout != Npad:
        out = out[:, :cout]
    return out


def _gn_silu_kernel(x_ref, gm_ref, w_ref, b_ref, o_ref, *, eps, inv_n):
    x = x_ref[0]                                          # (HW, C) f32
    s1 = jnp.sum(x, axis=0, keepdims=True)                # (1, C)
    s2 = jnp.sum(x * x, axis=0, keepdims=True)            # (1, C)
    gm = gm_ref[...]                                      # (C, C) group membership
    mean = jnp.dot(s1, gm, preferred_element_type=jnp.float32) * inv_n
    ex2 = jnp.dot(s2, gm, preferred_element_type=jnp.float32) * inv_n
    var = jnp.maximum(ex2 - mean * mean, 0.0)
    y = (x - mean) * jax.lax.rsqrt(var + eps) * w_ref[...] + b_ref[...]
    # SiLU with numerically-safe sigmoid: sigmoid(y) = 0.5*(tanh(y/2)+1) (EUP).
    o_ref[0] = y * (0.5 * jnp.tanh(0.5 * y) + 0.5)


@jax.jit
def group_norm_silu(x, w, b):
    """GroupNorm(num_groups=32, eps=1e-5) + SiLU.  x: (B, H, W, C) NHWC."""
    G = 32
    B, H, W, C = x.shape
    HW = H * W
    Cg = C // G
    # TODO(synk): very large HW*C feature maps would need a row-tiled two-pass
    # (stats then normalize) variant; single (HW, C) block per batch here.
    ch = jnp.arange(C, dtype=jnp.int32) // Cg
    gmask = (ch[:, None] == ch[None, :]).astype(jnp.float32)
    out = pl.pallas_call(
        partial(_gn_silu_kernel, eps=1e-5, inv_n=1.0 / float(HW * Cg)),
        out_shape=jax.ShapeDtypeStruct((B, HW, C), jnp.float32),
        grid=(B,),
        in_specs=[
            pl.BlockSpec((1, HW, C), lambda i: (i, 0, 0)),
            pl.BlockSpec((C, C), lambda i: (0, 0)),
            pl.BlockSpec((1, C), lambda i: (0, 0)),
            pl.BlockSpec((1, C), lambda i: (0, 0)),
        ],
        out_specs=pl.BlockSpec((1, HW, C), lambda i: (i, 0, 0)),
        compiler_params=_cparams("parallel"),
    )(x.reshape(B, HW, C), gmask, w.reshape(1, C), b.reshape(1, C))
    return out.reshape(B, H, W, C)


def _ln_kernel(x_ref, w_ref, b_ref, o_ref, *, eps):
    x = x_ref[...]
    mean = jnp.mean(x, axis=-1, keepdims=True)
    xc = x - mean
    var = jnp.mean(xc * xc, axis=-1, keepdims=True)
    o_ref[...] = xc * jax.lax.rsqrt(var + eps) * w_ref[...] + b_ref[...]


@partial(jax.jit, static_argnames=("eps",))
def layer_norm(x2d, w, b, *, eps):
    """LayerNorm over the last dim.  x2d: (M, C), row-tiled grid."""
    M, C = x2d.shape
    bm, Mp = None, M
    for c in (1024, 512, 256, 128, 64, 32, 16, 8):
        if M % c == 0:
            bm = c
            break
    if bm is None:
        bm = 8
        Mp = _round_up(M, 8)
        x2d = jnp.pad(x2d, ((0, Mp - M), (0, 0)))
    while bm > 8 and bm * C * 4 > (4 << 20):
        bm //= 2
    out = pl.pallas_call(
        partial(_ln_kernel, eps=eps),
        out_shape=jax.ShapeDtypeStruct((Mp, C), jnp.float32),
        grid=(Mp // bm,),
        in_specs=[
            pl.BlockSpec((bm, C), lambda i: (i, 0)),
            pl.BlockSpec((1, C), lambda i: (0, 0)),
            pl.BlockSpec((1, C), lambda i: (0, 0)),
        ],
        out_specs=pl.BlockSpec((bm, C), lambda i: (i, 0)),
        compiler_params=_cparams("parallel"),
    )(x2d, w.reshape(1, C), b.reshape(1, C))
    return out[:M] if Mp != M else out


def _attn_kernel(q_ref, k_ref, v_ref, o_ref, *, scale):
    q = q_ref[0]                                          # (h, tq, dh) bf16
    k = k_ref[0]                                          # (h, Nk, dh) bf16
    v = v_ref[0]
    s = jnp.einsum("hqd,hkd->hqk", q, k,
                   preferred_element_type=jnp.float32) * scale
    s = s - jnp.max(s, axis=-1, keepdims=True)
    p = jnp.exp(s)
    p = p * pl.reciprocal(jnp.sum(p, axis=-1, keepdims=True), approx=True)
    o_ref[0] = jnp.einsum("hqk,hkd->hqd", p.astype(jnp.bfloat16), v,
                          preferred_element_type=jnp.float32)


@partial(jax.jit, static_argnames=("scale",))
def attention_pallas(q, k, v, scale):
    """q: (B, h, Nq, dh), k/v: (B, h, Nk, dh) -> (B, h, Nq, dh) f32."""
    B, h, Nq, dh = q.shape
    Nk = k.shape[2]
    q = q.astype(jnp.bfloat16)
    k = k.astype(jnp.bfloat16)
    v = v.astype(jnp.bfloat16)
    tq = Nq
    if Nq > 512:                                          # query tiling; K/V resident
        for c in (512, 256, 128, 64, 32, 16, 8):
            if Nq % c == 0:
                tq = c
                break
    return pl.pallas_call(
        partial(_attn_kernel, scale=scale),
        out_shape=jax.ShapeDtypeStruct((B, h, Nq, dh), jnp.float32),
        grid=(B, Nq // tq),
        in_specs=[
            pl.BlockSpec((1, h, tq, dh), lambda b, i: (b, 0, i, 0)),
            pl.BlockSpec((1, h, Nk, dh), lambda b, i: (b, 0, 0, 0)),
            pl.BlockSpec((1, h, Nk, dh), lambda b, i: (b, 0, 0, 0)),
        ],
        out_specs=pl.BlockSpec((1, h, tq, dh), lambda b, i: (b, 0, i, 0)),
        compiler_params=_cparams("parallel", "parallel"),
    )(q, k, v)


def _dwconv_kernel(xp_ref, w_ref, b_ref, o_ref, *, H, W):
    xp = xp_ref[0]                                        # (H+2, W+2, cg)
    w = w_ref[...]                                        # (9, cg)
    acc = xp[0:H, 0:W, :] * w[0]
    for t in range(1, 9):
        i, j = divmod(t, 3)
        # channel (lane) axis is never sliced; shifts land on sublane/row axes
        acc = acc + xp[i:i + H, j:j + W, :] * w[t]
    o_ref[0] = acc + b_ref[...]


@jax.jit
def dwconv3x3(x, w, b):
    """Depthwise 3x3 conv, stride 1, pad 1.  x: (B, H, W, C) NHWC, w: (9, C)."""
    B, H, W, C = x.shape
    xp = jnp.pad(x, ((0, 0), (1, 1), (1, 1), (0, 0)))
    cg = C
    for c in (256, 128):
        if C % c == 0:
            cg = c
            break
    while cg > 128 and (H + 2) * (W + 2) * cg * 4 > (4 << 20) and C % (cg // 2) == 0:
        cg //= 2
    return pl.pallas_call(
        partial(_dwconv_kernel, H=H, W=W),
        out_shape=jax.ShapeDtypeStruct((B, H, W, C), jnp.float32),
        grid=(B, C // cg),
        in_specs=[
            pl.BlockSpec((1, H + 2, W + 2, cg), lambda i, c: (i, 0, 0, c)),
            pl.BlockSpec((9, cg), lambda i, c: (0, c)),
            pl.BlockSpec((1, cg), lambda i, c: (0, c)),
        ],
        out_specs=pl.BlockSpec((1, H, W, cg), lambda i, c: (i, 0, 0, c)),
        compiler_params=_cparams("parallel", "parallel"),
    )(xp, w, b.reshape(1, C))


# ----------------------------------------------------------------------------
# Plain-JAX glue built on top of the Pallas kernels (NHWC activations)
# ----------------------------------------------------------------------------

@partial(jax.jit, static_argnames=("k", "stride", "pad", "cout"))
def _conv2d_impl(x, w, b, *, k, stride, pad, cout):
    """NHWC conv via bf16 im2col + tiled Pallas matmul.  w: (k*k*Cin, Npad) bf16."""
    B, H, W, C = x.shape
    xb = x.astype(jnp.bfloat16)                   # bf16 patches: half the HBM bytes
    if k == 1 and stride == 1 and pad == 0:
        Ho, Wo = H, W
        patches = xb.reshape(B * H * W, C)
    else:
        # TODO(synk): im2col patches still materialized in HBM (k^2 read
        # amplification), though now bf16; not yet fused into the matmul kernel.
        xp = jnp.pad(xb, ((0, 0), (pad, pad), (pad, pad), (0, 0)))
        Ho = (H + 2 * pad - k) // stride + 1
        Wo = (W + 2 * pad - k) // stride + 1
        taps = []
        for i in range(k):
            for j in range(k):
                taps.append(jax.lax.slice(
                    xp, (0, i, j, 0),
                    (B, i + (Ho - 1) * stride + 1, j + (Wo - 1) * stride + 1, C),
                    (1, stride, stride, 1)))
        patches = jnp.stack(taps, axis=3).reshape(B * Ho * Wo, k * k * C)
    out = matmul_bias(patches, w, b, cout=cout)
    return out.reshape(B, Ho, Wo, cout)


def conv2d(x, p, k, stride, pad):
    return _conv2d_impl(x, p["w"], p["b"], k=k, stride=stride, pad=pad,
                        cout=p["cout"])


def linear(x2d, p):
    return matmul_bias(x2d, p["w"], p["b"], cout=p["cout"])


def upsample_nearest_to(x, out_h):
    """Nearest upsample (integer scale) via broadcast+reshape (no gather)."""
    B, H, W, C = x.shape
    f = out_h // H
    if f == 1:
        return x
    x = jnp.broadcast_to(x[:, :, None, :, None, :], (B, H, f, W, f, C))
    return x.reshape(B, H * f, W * f, C)


# ----------------------------------------------------------------------------
# Deterministic parameter initialization (synthetic; no checkpoint loading)
# ----------------------------------------------------------------------------

_RNG = np.random.default_rng(0)


def _nparam(*shape):
    return _RNG.standard_normal(shape).astype(np.float32) * 0.02


def init_conv(cin, cout, k):
    npad = max(128, _round_up(cout, 128))
    w = np.zeros((k * k * cin, npad), np.float32)
    w[:, :cout] = _nparam(k * k * cin, cout)
    return {"w": jnp.asarray(w, dtype=jnp.bfloat16),     # bf16 weights once at init
            "b": jnp.zeros((npad,), jnp.float32), "cout": cout}


def init_linear(cin, cout):
    npad = max(128, _round_up(cout, 128))
    w = np.zeros((cin, npad), np.float32)
    w[:, :cout] = _nparam(cin, cout)
    return {"w": jnp.asarray(w, dtype=jnp.bfloat16),
            "b": jnp.zeros((npad,), jnp.float32), "cout": cout}


def init_norm(c):
    return {"w": jnp.ones((c,), jnp.float32), "b": jnp.zeros((c,), jnp.float32)}


# ----------------------------------------------------------------------------
# RB block
# ----------------------------------------------------------------------------

def init_rb(cin, cout):
    return {
        "gn1": init_norm(cin), "conv1": init_conv(cin, cout, 3),
        "gn2": init_norm(cout), "conv2": init_conv(cout, cout, 3),
        "skip": None if cin == cout else init_conv(cin, cout, 1),
    }


def rb_fwd(p, x):
    h = group_norm_silu(x, p["gn1"]["w"], p["gn1"]["b"])
    h = conv2d(h, p["conv1"], 3, 1, 1)
    h = group_norm_silu(h, p["gn2"]["w"], p["gn2"]["b"])
    h = conv2d(h, p["conv2"], 3, 1, 1)
    s = x if p["skip"] is None else conv2d(x, p["skip"], 1, 1, 0)
    return h + s


# ----------------------------------------------------------------------------
# PVTv2-B3 backbone (patch_size=4, dims [64,128,320,512], depths [3,4,18,3])
# ----------------------------------------------------------------------------

EMBED_DIMS = [64, 128, 320, 512]
NUM_HEADS = [1, 2, 5, 8]
MLP_RATIOS = [8, 8, 4, 4]
DEPTHS = [3, 4, 18, 3]
SR_RATIOS = [8, 4, 2, 1]


def init_pvt(in_ch=3):
    stages = []
    for s in range(4):
        dim = EMBED_DIMS[s]
        k = 7 if s == 0 else 3
        stride = 4 if s == 0 else 2
        cin = in_ch if s == 0 else EMBED_DIMS[s - 1]
        pe = {"conv": init_conv(cin, dim, k), "ln": init_norm(dim),
              "k": k, "stride": stride}
        blocks = []
        for _ in range(DEPTHS[s]):
            sr = SR_RATIOS[s]
            attn = {"q": init_linear(dim, dim),
                    "kv": init_linear(dim, 2 * dim),
                    "proj": init_linear(dim, dim),
                    "sr": init_conv(dim, dim, sr) if sr > 1 else None,
                    "sr_ln": init_norm(dim) if sr > 1 else None}
            hid = dim * MLP_RATIOS[s]
            mlp = {"fc1": init_linear(dim, hid),
                   "dw_w": jnp.asarray(_nparam(9, hid)),
                   "dw_b": jnp.zeros((hid,), jnp.float32),
                   "fc2": init_linear(hid, dim)}
            blocks.append({"norm1": init_norm(dim), "attn": attn,
                           "norm2": init_norm(dim), "mlp": mlp})
        stages.append({"pe": pe, "blocks": blocks, "norm": init_norm(dim),
                       "heads": NUM_HEADS[s], "sr": SR_RATIOS[s]})
    return stages


def attn_fwd(p, x, H, W, heads, sr):
    B, N, C = x.shape
    dh = C // heads
    scale = float(dh) ** -0.5
    q = linear(x.reshape(B * N, C), p["q"]).reshape(B, N, heads, dh)
    q = q.transpose(0, 2, 1, 3)                           # (B, h, N, dh)
    if sr > 1:
        xs = x.reshape(B, H, W, C)
        xs = conv2d(xs, p["sr"], sr, sr, 0)
        Hs, Ws = xs.shape[1], xs.shape[2]
        xs = layer_norm(xs.reshape(B * Hs * Ws, C),
                        p["sr_ln"]["w"], p["sr_ln"]["b"], eps=1e-5)
        xs = xs.reshape(B, Hs * Ws, C)
    else:
        xs = x
    Nk = xs.shape[1]
    kv = linear(xs.reshape(B * Nk, C), p["kv"]).reshape(B, Nk, 2, heads, dh)
    kv = kv.transpose(2, 0, 3, 1, 4)                      # (2, B, h, Nk, dh)
    k, v = kv[0], kv[1]
    o = attention_pallas(q, k, v, scale=scale)            # (B, h, N, dh)
    o = o.transpose(0, 2, 1, 3).reshape(B * N, C)
    return linear(o, p["proj"]).reshape(B, N, C)


def mlp_fwd(p, x, H, W):
    B, N, C = x.shape
    hid = p["dw_b"].shape[0]
    h = linear(x.reshape(B * N, C), p["fc1"]).reshape(B, H, W, hid)
    h = dwconv3x3(h, p["dw_w"], p["dw_b"])
    # TODO(synk): exact (erf-based) GELU kept as plain-JAX glue (not fused into
    # the dwconv epilogue; erf lowering inside Mosaic not relied upon).
    h = jax.nn.gelu(h, approximate=False)
    h = linear(h.reshape(B * N, hid), p["fc2"]).reshape(B, N, C)
    return h


def block_fwd(p, x, H, W, heads, sr):
    B, N, C = x.shape
    y = layer_norm(x.reshape(B * N, C), p["norm1"]["w"], p["norm1"]["b"],
                   eps=1e-6).reshape(B, N, C)
    x = x + attn_fwd(p["attn"], y, H, W, heads, sr)
    y = layer_norm(x.reshape(B * N, C), p["norm2"]["w"], p["norm2"]["b"],
                   eps=1e-6).reshape(B, N, C)
    x = x + mlp_fwd(p["mlp"], y, H, W)
    return x


def pvt_pyramid(stages, x):
    B = x.shape[0]
    pyramid = []
    h = x
    for st in stages:
        pe = st["pe"]
        h = conv2d(h, pe["conv"], pe["k"], pe["stride"], pe["k"] // 2)
        Hh, Wh, C = h.shape[1], h.shape[2], h.shape[3]
        h2 = layer_norm(h.reshape(B * Hh * Wh, C), pe["ln"]["w"], pe["ln"]["b"],
                        eps=1e-5).reshape(B, Hh * Wh, C)
        for blk in st["blocks"]:
            h2 = block_fwd(blk, h2, Hh, Wh, st["heads"], st["sr"])
        h2 = layer_norm(h2.reshape(B * Hh * Wh, C), st["norm"]["w"],
                        st["norm"]["b"], eps=1e-6)
        feat = h2.reshape(B, Hh, Wh, C)                   # NHWC, no transpose
        pyramid.append(feat)
        h = feat
    return pyramid


# ----------------------------------------------------------------------------
# TB (transformer branch)
# ----------------------------------------------------------------------------

def init_tb():
    return {
        "stages": init_pvt(3),
        "LE": [[init_rb(EMBED_DIMS[i], 64), init_rb(64, 64)] for i in range(4)],
        "SFA": [[init_rb(128, 64), init_rb(64, 64)] for _ in range(3)],
    }


def tb_fwd(p, x, size):
    pyr = pvt_pyramid(p["stages"], x)
    # TODO(synk): original hardcodes nn.Upsample(size=88) (== 352 // 4); we use size // 4.
    emph = []
    for i in range(4):
        e = rb_fwd(p["LE"][i][0], pyr[i])
        e = rb_fwd(p["LE"][i][1], e)
        e = upsample_nearest_to(e, size // 4)
        emph.append(e)
    l = emph[3]
    for i in range(2, -1, -1):
        cat = jnp.concatenate([emph[i], l], axis=-1)
        cat = rb_fwd(p["SFA"][i][0], cat)
        l = rb_fwd(p["SFA"][i][1], cat)
    return l


# ----------------------------------------------------------------------------
# FCB (fully-convolutional branch, UNet-like)
# ----------------------------------------------------------------------------

def init_fcb(in_ch=3, mlc=32, mults=(1, 1, 2, 2, 4, 4), n_down=6, n_up=6, n_rbs=2):
    enc = [("conv", init_conv(in_ch, mlc, 3))]
    ch = mlc
    chans = [mlc]
    for level in range(n_down):
        m = mults[level]
        for _ in range(n_rbs):
            enc.append(("rb", init_rb(ch, m * mlc)))
            ch = m * mlc
            chans.append(ch)
        if level != n_down - 1:
            enc.append(("down", init_conv(ch, ch, 3)))
            chans.append(ch)
    middle = [init_rb(ch, ch), init_rb(ch, ch)]
    dec = []
    for level in range(n_up):
        m = list(mults)[::-1][level]
        for block in range(n_rbs + 1):
            d = {"rb": init_rb(ch + chans.pop(), m * mlc), "up": None}
            ch = m * mlc
            if level < n_up - 1 and block == n_rbs:
                d["up"] = init_conv(ch, ch, 3)
            dec.append(d)
    return {"enc": enc, "middle": middle, "dec": dec}


def fcb_fwd(p, x):
    hs = []
    h = x
    for kind, pp in p["enc"]:
        if kind == "conv":
            h = conv2d(h, pp, 3, 1, 1)
        elif kind == "down":
            h = conv2d(h, pp, 3, 2, 1)
        else:
            h = rb_fwd(pp, h)
        hs.append(h)
    for pp in p["middle"]:
        h = rb_fwd(pp, h)
    for d in p["dec"]:
        cat = jnp.concatenate([h, hs.pop()], axis=-1)
        h = rb_fwd(d["rb"], cat)
        if d["up"] is not None:
            h = upsample_nearest_to(h, 2 * h.shape[1])
            h = conv2d(h, d["up"], 3, 1, 1)
    return h


# ----------------------------------------------------------------------------
# FCBFormer
# ----------------------------------------------------------------------------

def init_fcbformer():
    return {
        "TB": init_tb(),
        "FCB": init_fcb(),
        "PH": {"rb1": init_rb(64 + 32, 64), "rb2": init_rb(64, 64),
               "out": init_conv(64, 1, 1)},
    }


def fcbformer_fwd(p, x_nchw, size):
    x = jnp.transpose(x_nchw, (0, 2, 3, 1))       # one-time NCHW -> NHWC
    x1 = tb_fwd(p["TB"], x, size)                 # (B, size/4, size/4, 64)
    x2 = fcb_fwd(p["FCB"], x)                     # (B, size, size, 32)
    x1 = upsample_nearest_to(x1, size)            # up_tosize
    h = jnp.concatenate([x1, x2], axis=-1)        # (B, size, size, 96)
    h = rb_fwd(p["PH"]["rb1"], h)
    h = rb_fwd(p["PH"]["rb2"], h)
    out = conv2d(h, p["PH"]["out"], 1, 1, 0)      # (B, size, size, 1)
    B = out.shape[0]
    return out.reshape(B, 1, size, size)          # C == 1 -> reshape == transpose


if __name__ == "__main__":
    SIZE = 32   # small stand-in for 352; must be divisible by 32
    params = init_fcbformer()
    x = jax.random.normal(jax.random.PRNGKey(0), (2, 3, SIZE, SIZE), jnp.float32)
    out = fcbformer_fwd(params, x, SIZE)
    out = jax.block_until_ready(out)
    assert out.shape == (2, 1, SIZE, SIZE), out.shape
    assert bool(jnp.all(jnp.isfinite(out)))
    print("KERNEL_OK")
</pallas_src>

<mosaic_0001>
module attributes {stable_mosaic.version = 11 : i64} {
  func.func @_matmul_bias_kernel(%arg0: i32, %arg1: i32, %arg2: memref<128x147xbf16, #tpu.memory_space<vmem>>, %arg3: memref<147x128xbf16, #tpu.memory_space<vmem>>, %arg4: memref<1x128xf32, #tpu.memory_space<vmem>>, %arg5: memref<128x128xf32, #tpu.memory_space<vmem>>) attributes {dimension_semantics = [#tpu.dimension_semantics<parallel>, #tpu.dimension_semantics<parallel>], iteration_bounds = array<i64: 1, 1>, scalar_prefetch = 0 : i64, scratch_operands = 0 : i64, tpu.core_type = #tpu.core_type<tc>, window_params = [{transform_indices = @transform_0, window_bounds = array<i64: 128, 147>}, {transform_indices = @transform_1, window_bounds = array<i64: 147, 128>}, {transform_indices = @transform_2, window_bounds = array<i64: 1, 128>}, {transform_indices = @transform_3, window_bounds = array<i64: 128, 128>}]} {
    %c0 = arith.constant 0 : index
    %c0_0 = arith.constant 0 : index
    %0 = vector.load %arg2[%c0, %c0_0] : memref<128x147xbf16, #tpu.memory_space<vmem>>, vector<128x147xbf16>
    %c0_1 = arith.constant 0 : index
    %c0_2 = arith.constant 0 : index
    %1 = vector.load %arg3[%c0_1, %c0_2] : memref<147x128xbf16, #tpu.memory_space<vmem>>, vector<147x128xbf16>
    %cst = arith.constant dense<0.000000e+00> : vector<128x128xf32>
    %2 = tpu.matmul %0, %1, %cst {dimension_numbers = #tpu.dot_dimension_numbers<[1], [0], [0], [1], [0, 0, 1, 1], [], []>} : vector<128x147xbf16>, vector<147x128xbf16>, vector<128x128xf32> -> vector<128x128xf32>
    %c0_3 = arith.constant 0 : index
    %c0_4 = arith.constant 0 : index
    %3 = vector.load %arg4[%c0_3, %c0_4] : memref<1x128xf32, #tpu.memory_space<vmem>>, vector<1x128xf32>
    %4 = vector.broadcast %3 : vector<1x128xf32> to vector<128x128xf32>
    %5 = arith.addf %2, %4 : vector<128x128xf32>
    %c0_5 = arith.constant 0 : index
    %c0_6 = arith.constant 0 : index
    %6 = vector.load %arg5[%c0_5, %c0_6] : memref<128x128xf32, #tpu.memory_space<vmem>>, vector<128x128xf32>
    tpu.vector_store %arg5[%c0_5, %c0_6], %5 {strides = array<i32>} : memref<128x128xf32, #tpu.memory_space<vmem>>, vector<128x128xf32>,
    return
  }
  func.func @transform_0(%arg0: i32, %arg1: i32) -> (i32, i32) {
    %c0_i32 = arith.constant 0 : i32
    %c0_i32_0 = arith.constant 0 : i32
    return %arg1, %c0_i32 : i32, i32
  }
  func.func @transform_1(%arg0: i32, %arg1: i32) -> (i32, i32) {
    %c0_i32 = arith.constant 0 : i32
    %c0_i32_0 = arith.constant 0 : i32
    return %c0_i32, %arg0 : i32, i32
  }
  func.func @transform_2(%arg0: i32, %arg1: i32) -> (i32, i32) {
    %c0_i32 = arith.constant 0 : i32
    %c0_i32_0 = arith.constant 0 : i32
    return %c0_i32, %arg0 : i32, i32
  }
  func.func @transform_3(%arg0: i32, %arg1: i32) -> (i32, i32) {
    %c0_i32 = arith.constant 0 : i32
    return %arg1, %arg0 : i32, i32
  }
}

</mosaic_0001>

<bundles_post_ra>
// kernel: matmul_bias.1
= control target key start
LH: loop header
LB: loop body
LE: loop exit
PB: predicated region body
PF: predicated region fallthrough
CT: control target
= control target key end

     0   :  { %v426_v0 = vmov 0   ;;  %vm186_vm0 = vcmask 154624   ;;  %vm211_vm1 = vcmask 1040384   ;;  %vm212_vm2 = vcmask 1041408   ;;  %s585_s1 = inlined_call_operand.vmem [shape: bf16[147,128], index: 1, kind: input, shape index: {}]   ;;  %s586_s0 = inlined_call_operand.vmem [shape: bf16[128,147], index: 0, kind: input, shape index: {}]   ;;  %s587_s2 = inlined_call_operand.vmem [shape: f32[1,128], index: 2, kind: input, shape index: {}]   ;;  %s588_s3 = inlined_call_operand.vmem [shape: f32[128,128], index: 3, kind: output, shape index: {}]  }
   0x1   :  { %218 = vmatprep.subr.bf16.mxu0 %v426_v0  ;;  %370 = vmatprep.subr.bf16.mxu1 %v426_v0  ;;  %v392_v1 = vld [vmem:[%s585_s1 + $0x38] sm:$0xff]   ;;  %v393_v2 = vld [vmem:[%s585_s1 + $0x30] sm:$0xff]   ;;  %v394_v3 = vld [vmem:[%s585_s1 + $0x28] sm:$0xff]   ;;  %v427_v10 = vmov 65535  }
   0x2   :  { %219 = vmatpush1.bf16.msra.mxu0 %v392_v1  ;;  %380 = vmatpush1.bf16.msra.mxu1 %v392_v1  ;;  %v395_v4 = vld [vmem:[%s585_s1 + $0x20] sm:$0xff]   ;;  %v396_v7 = vld [vmem:[%s585_s1 + $0x18] sm:$0xff]   ;;  %v397_v8 = vld [vmem:[%s585_s1 + $0x10] sm:$0xff]   ;;  %v213_v11 = vsel %vm211_vm1, 4294967295, %v427_v10 }
   0x3   :  { %220 = vmatprep.subr.bf16.mxu0 %v426_v0  ;;  %371 = vmatprep.subr.bf16.mxu1 %v426_v0  ;;  %v404_v5 = vld [vmem:[%s586_s0 + $0x4] ss:$8 sps:$4 sm:$0xff]   ;;  %v400_v13 = vld [vmem:[%s585_s1 + $0x48] ss:$0 sps:$4 sm:$0x33]   ;;  %v214_v14 = vsel %vm212_vm2, %v213_v11, 0 }
   0x4   :  { %362 = vmatprep.mubr.msk.bf16.mxu0 %vm186_vm0, %v404_v5  ;;  %v407_v6 = vld [vmem:[%s586_s0 + $0x44] ss:$8 sps:$4 sm:$0xff]   ;;  %v216_v15 = vand.u32 %v400_v13, %v214_v14  ;;  %v402_v17 = vld [vmem:[%s586_s0] ss:$8 sps:$4 sm:$0xff]   ;;  %v408_v19 = vld [vmem:[%s586_s0 + $0x14] ss:$8 sps:$4 sm:$0xff]  }
   0x5   :  { %366 = vmatprep.mubr.msk.bf16.mxu1 %vm186_vm0, %v407_v6  ;;  %v398_v9 = vld [vmem:[%s585_s1 + $0x8] sm:$0xff]   ;;  %v399_v12 = vld [vmem:[%s585_s1] sm:$0xff]   ;;  %v410_v20 = vld [vmem:[%s586_s0 + $0x54] ss:$8 sps:$4 sm:$0xff]  }
   0x6   :  { %221 = vmatpush1.bf16.msra.mxu0 %v393_v2  ;;  %381 = vmatpush1.bf16.msra.mxu1 %v393_v2  ;;  %v401_v16 = vld [vmem:[%s585_s1 + $0x40] sm:$0xff]   ;;  %v412_v21 = vld [vmem:[%s586_s0 + $0x10] ss:$8 sps:$4 sm:$0xff]   ;;  %v420_v27 = vld [vmem:[%s586_s0 + $0x34] ss:$8 sps:$4 sm:$0xff]  }
   0x7   :  { %222 = vmatprep.subr.bf16.mxu0 %v426_v0  ;;  %372 = vmatprep.subr.bf16.mxu1 %v426_v0  ;;  %v405_v18 = vld [vmem:[%s586_s0 + $0x40] ss:$8 sps:$4 sm:$0xff]   ;;  %v413_v22 = vld [vmem:[%s586_s0 + $0x50] ss:$8 sps:$4 sm:$0xff]   ;;  %v414_v23 = vld [vmem:[%s586_s0 + $0x24] ss:$8 sps:$4 sm:$0xff]  }
   0x8   :  { %v416_v24 = vld [vmem:[%s586_s0 + $0x64] ss:$8 sps:$4 sm:$0xff]   ;;  %v418_v25 = vld [vmem:[%s586_s0 + $0x20] ss:$8 sps:$4 sm:$0xff]   ;;  %v422_v28 = vld [vmem:[%s586_s0 + $0x74] ss:$8 sps:$4 sm:$0xff]  }
   0x9   :  { %v419_v26 = vld [vmem:[%s586_s0 + $0x60] ss:$8 sps:$4 sm:$0xff]   ;;  %v424_v29 = vld [vmem:[%s586_s0 + $0x30] ss:$8 sps:$4 sm:$0xff]  }
   0xa   :  { %223 = vmatpush1.bf16.msra.mxu0 %v394_v3  ;;  %382 = vmatpush1.bf16.msra.mxu1 %v394_v3  ;;  %v425_v30 = vld [vmem:[%s586_s0 + $0x70] ss:$8 sps:$4 sm:$0xff]   ;;  %v335_v31 = vld [vmem:[%s587_s2] ss:$0 sm:$0xff] }
   0xb   :  { %224 = vmatprep.subr.bf16.mxu0 %v426_v0  ;;  %373 = vmatprep.subr.bf16.mxu1 %v426_v0 }
   0xe   :  { %225 = vmatpush1.bf16.msra.mxu0 %v395_v4  ;;  %383 = vmatpush1.bf16.msra.mxu1 %v395_v4 }
   0xf   :  { %226 = vmatprep.subr.bf16.mxu0 %v426_v0  ;;  %374 = vmatprep.subr.bf16.mxu1 %v426_v0 }
  0x12   :  { %227 = vmatpush1.bf16.msra.mxu0 %v396_v7  ;;  %384 = vmatpush1.bf16.msra.mxu1 %v396_v7 }
  0x13   :  { %228 = vmatprep.subr.bf16.mxu0 %v426_v0  ;;  %375 = vmatprep.subr.bf16.mxu1 %v426_v0 }
  0x16   :  { %229 = vmatpush1.bf16.msra.mxu0 %v397_v8  ;;  %385 = vmatpush1.bf16.msra.mxu1 %v397_v8 }
  0x17   :  { %230 = vmatprep.subr.bf16.mxu0 %v426_v0  ;;  %376 = vmatprep.subr.bf16.mxu1 %v426_v0 }
  0x1a   :  { %231 = vmatpush1.bf16.msra.mxu0 %v398_v9  ;;  %386 = vmatpush1.bf16.msra.mxu1 %v398_v9 }
  0x1b   :  { %232 = vmatprep.subr.bf16.mxu0 %v426_v0  ;;  %377 = vmatprep.subr.bf16.mxu1 %v426_v0 }
  0x1e   :  { %233 = vmatpush1.bf16.msra.mxu0 %v399_v12  ;;  %387 = vmatpush1.bf16.msra.mxu1 %v399_v12 }
  0x1f   :  { %246 = vmatprep.subr.bf16.mxu0 %v426_v0  ;;  %378 = vmatprep.subr.bf16.mxu1 %v426_v0 }
  0x22   :  { %247 = vmatpush2.bf16.msra.mxu0 %v216_v15  ;;  %388 = vmatpush2.bf16.msra.mxu1 %v216_v15 }
  0x23   :  { %248 = vmatprep.subr.bf16.mxu0 %v426_v0  ;;  %379 = vmatprep.subr.bf16.mxu1 %v426_v0 }
  0x26   :  { %249 = vmatpush2.bf16.msra.mxu0 %v401_v16  ;;  %389 = vmatpush2.bf16.msra.mxu1 %v401_v16 }
  0x29   :  { %251 = vmatmul.mubr.bf16.vlgmr.msra.gmra.mxu0 %v402_v17  ;;  %283 = vmatmul.mubr.bf16.vlgmr.msra.gmra.mxu1 %v405_v18 }
  0x2a   :  { %363 = vmatprep.mubr.msk.bf16.mxu0 %vm186_vm0, %v408_v19  ;;  %367 = vmatprep.mubr.msk.bf16.mxu1 %vm186_vm0, %v410_v20 }
  0x31   :  { %259 = vmatmul.mubr.bf16.gmra.mxu0 %v412_v21  ;;  %291 = vmatmul.mubr.bf16.gmra.mxu1 %v413_v22 }
  0x32   :  { %364 = vmatprep.mubr.msk.bf16.mxu0 %vm186_vm0, %v414_v23  ;;  %368 = vmatprep.mubr.msk.bf16.mxu1 %vm186_vm0, %v416_v24 }
  0x39   :  { %267 = vmatmul.mubr.bf16.gmra.mxu0 %v418_v25  ;;  %299 = vmatmul.mubr.bf16.gmra.mxu1 %v419_v26 }
  0x3a   :  { %365 = vmatprep.mubr.msk.bf16.mxu0 %vm186_vm0, %v420_v27  ;;  %369 = vmatprep.mubr.msk.bf16.mxu1 %vm186_vm0, %v422_v28 }
  0x41   :  { %275 = vmatmul.mubr.bf16.gmra.mxu0 %v424_v29  ;;  %307 = vmatmul.mubr.bf16.gmra.mxu1 %v425_v30 }
  0xe9   :  { %v252_v32 = vpop.f32.mrf.mxu0  ;;  %v284_v33 = vpop.f32.mrf.mxu1 }
  0xea   :  { %v253_v34 = vadd.f32 %v335_v31, %v252_v32  ;;  %v285_v35 = vadd.f32 %v335_v31, %v284_v33 }
  0xeb   :  { %v254_v36 = vpop.f32.mrf.mxu0  ;;  %v286_v37 = vpop.f32.mrf.mxu1 }
  0xec   :  { %315 = vst [vmem:[%s588_s3] sm:$0xff] %v253_v34  ;;  %323 = vst [vmem:[%s588_s3 + $0x40] sm:$0xff] %v285_v35 }
  0xed   :  { %v255_v38 = vpop.f32.mrf.mxu0  ;;  %v287_v39 = vpop.f32.mrf.mxu1 }
  0xee   :  { %v256_v40 = vadd.f32 %v335_v31, %v255_v38  ;;  %v288_v41 = vadd.f32 %v335_v31, %v287_v39 }
  0xef   :  { %v257_v42 = vpop.f32.mrf.mxu0  ;;  %v289_v43 = vpop.f32.mrf.mxu1 }
  0xf0   :  { %316 = vst [vmem:[%s588_s3 + $0x8] sm:$0xff] %v256_v40  ;;  %324 = vst [vmem:[%s588_s3 + $0x48] sm:$0xff] %v288_v41 }
  0xf1   :  { %v260_v44 = vpop.f32.mrf.mxu0  ;;  %v292_v45 = vpop.f32.mrf.mxu1 }
  0xf2   :  { %v261_v46 = vadd.f32 %v335_v31, %v260_v44  ;;  %v293_v47 = vadd.f32 %v335_v31, %v292_v45 }
  0xf3   :  { %v262_v48 = vpop.f32.mrf.mxu0  ;;  %v294_v49 = vpop.f32.mrf.mxu1 }
  0xf4   :  { %317 = vst [vmem:[%s588_s3 + $0x10] sm:$0xff] %v261_v46  ;;  %325 = vst [vmem:[%s588_s3 + $0x50] sm:$0xff] %v293_v47 }
  0xf5   :  { %v263_v50 = vpop.f32.mrf.mxu0  ;;  %v295_v51 = vpop.f32.mrf.mxu1 }
  0xf6   :  { %v264_v52 = vadd.f32 %v335_v31, %v263_v50  ;;  %v296_v53 = vadd.f32 %v335_v31, %v295_v51 }
  0xf7   :  { %v265_v54 = vpop.f32.mrf.mxu0  ;;  %v297_v55 = vpop.f32.mrf.mxu1 }
  0xf8   :  { %318 = vst [vmem:[%s588_s3 + $0x18] sm:$0xff] %v264_v52  ;;  %326 = vst [vmem:[%s588_s3 + $0x58] sm:$0xff] %v296_v53 }
  0xf9   :  { %v268_v56 = vpop.f32.mrf.mxu0  ;;  %v300_v57 = vpop.f32.mrf.mxu1 }
  0xfa   :  { %v269_v58 = vadd.f32 %v335_v31, %v268_v56  ;;  %v301_v59 = vadd.f32 %v335_v31, %v300_v57 }
  0xfb   :  { %v270_v60 = vpop.f32.mrf.mxu0  ;;  %v302_v61 = vpop.f32.mrf.mxu1 }
  0xfc   :  { %319 = vst [vmem:[%s588_s3 + $0x20] sm:$0xff] %v269_v58  ;;  %327 = vst [vmem:[%s588_s3 + $0x60] sm:$0xff] %v301_v59 }
  0xfd   :  { %v271_v62 = vpop.f32.mrf.mxu0  ;;  %v303_v63 = vpop.f32.mrf.mxu1 }
  0xfe   :  { %v272_v0 = vadd.f32 %v335_v31, %v271_v62  ;;  %v304_v1 = vadd.f32 %v335_v31, %v303_v63 }
  0xff   :  { %v273_v2 = vpop.f32.mrf.mxu0  ;;  %v305_v3 = vpop.f32.mrf.mxu1 }
 0x100   :  { %320 = vst [vmem:[%s588_s3 + $0x28] sm:$0xff] %v272_v0  ;;  %328 = vst [vmem:[%s588_s3 + $0x68] sm:$0xff] %v304_v1 }
 0x101   :  { %v276_v4 = vpop.f32.mrf.mxu0  ;;  %v308_v5 = vpop.f32.mrf.mxu1 }
 0x102   :  { %v277_v6 = vadd.f32 %v335_v31, %v276_v4  ;;  %v309_v7 = vadd.f32 %v335_v31, %v308_v5 }
 0x103   :  { %v278_v8 = vpop.f32.mrf.mxu0  ;;  %v310_v9 = vpop.f32.mrf.mxu1 }
 0x104   :  { %321 = vst [vmem:[%s588_s3 + $0x30] sm:$0xff] %v277_v6  ;;  %329 = vst [vmem:[%s588_s3 + $0x70] sm:$0xff] %v309_v7 }
 0x105   :  { %v279_v10 = vpop.f32.mrf.mxu0  ;;  %v311_v11 = vpop.f32.mrf.mxu1 }
 0x106   :  { %v280_v12 = vadd.f32 %v335_v31, %v279_v10  ;;  %v312_v13 = vadd.f32 %v335_v31, %v311_v11 }
 0x107   :  { %v281_v14 = vpop.f32.mrf.mxu0  ;;  %v313_v15 = vpop.f32.mrf.mxu1 }
 0x108   :  { %322 = vst [vmem:[%s588_s3 + $0x38] sm:$0xff] %v280_v12  ;;  %330 = vst [vmem:[%s588_s3 + $0x78] sm:$0xff] %v312_v13 }

</bundles_post_ra>
